<compile_context>
chip_gen: v5e
topology: v5e:2x2
jax: 0.10.0
libtpu: 0.0.40
codegen_flags: <defaults>
</compile_context>

<pallas_src>
import functools

import jax
import jax.numpy as jnp
from jax import lax
from jax.experimental import pallas as pl
from jax.experimental.pallas import tpu as pltpu


def _round_up(x, m):
    return ((x + m - 1) // m) * m


def _dense_kernel(x_ref, w_ref, b_ref, o_ref):
    # y = x @ W^T + b ; W is kept in nn.Linear layout (Dout, Din) and the
    # transpose is expressed via dot_general's contraction dims (no copy).
    acc = lax.dot_general(
        x_ref[...], w_ref[...],
        dimension_numbers=(((1,), (1,)), ((), ())),
        preferred_element_type=jnp.float32)
    o_ref[...] = (acc + b_ref[...]).astype(o_ref.dtype)


def _dense_dropout_kernel(x_ref, w_ref, b_ref, u_ref, o_ref, *, keep_prob):
    acc = lax.dot_general(
        x_ref[...], w_ref[...],
        dimension_numbers=(((1,), (1,)), ((), ())),
        preferred_element_type=jnp.float32)
    y = acc + b_ref[...]
    # Dropout: keep with prob keep_prob, scale kept values by 1/keep_prob.
    keep = u_ref[...] < jnp.float32(keep_prob)
    y = jnp.where(keep, y * jnp.float32(1.0 / keep_prob), jnp.zeros_like(y))
    o_ref[...] = y.astype(o_ref.dtype)


def dense_block(x, w, b, *, dropout_p=0.2, training=True, rng_key=None,
                tm=None, tn=None):
    """DenseBlock forward: dropout(x @ W^T + b).

    x: (B, Din) f32, w: (Dout, Din) [PyTorch nn.Linear layout], b: (Dout,).
    """
    B, Din = x.shape
    Dout, Din_w = w.shape
    assert Din == Din_w and b.shape == (Dout,)
    out_dtype = x.dtype
    use_dropout = bool(training) and float(dropout_p) > 0.0
    keep_prob = 1.0 - float(dropout_p)

    # Tile sizes: sublane-aligned batch tile, lane-dense (>=128) output tile.
    # Sized so double-buffered tiles stay far under v7x's 64 MiB VMEM; can be
    # raised on v5e/v6e (128 MiB) via the tm/tn arguments.
    if tm is None:
        tm = min(_round_up(B, 8), 256)
    if tn is None:
        tn = min(_round_up(Dout, 128), 512)

    B_p = _round_up(B, tm)
    Dout_p = _round_up(Dout, tn)

    # bf16 MXU operands (f32 accumulate); pad to tile multiples.
    x_b = x.astype(jnp.bfloat16)
    w_b = w.astype(jnp.bfloat16)
    if B_p != B:
        x_b = jnp.pad(x_b, ((0, B_p - B), (0, 0)))
    if Dout_p != Dout:
        w_b = jnp.pad(w_b, ((0, Dout_p - Dout), (0, 0)))
    b_p = b.astype(jnp.float32).reshape(1, Dout)
    if Dout_p != Dout:
        b_p = jnp.pad(b_p, ((0, 0), (0, Dout_p - Dout)))

    grid = (B_p // tm, Dout_p // tn)

    in_specs = [
        pl.BlockSpec((tm, Din), lambda i, j: (i, 0)),   # x tile
        pl.BlockSpec((tn, Din), lambda i, j: (j, 0)),   # W tile (Dout, Din)
        pl.BlockSpec((1, tn),   lambda i, j: (0, j)),   # bias tile
    ]
    inputs = [x_b, w_b, b_p]

    if use_dropout:
        if rng_key is None:
            rng_key = jax.random.PRNGKey(0)
        u = jax.random.uniform(rng_key, (B_p, Dout_p), dtype=jnp.float32)
        in_specs.append(pl.BlockSpec((tm, tn), lambda i, j: (i, j)))
        inputs.append(u)
        kernel = functools.partial(_dense_dropout_kernel, keep_prob=keep_prob)
    else:
        kernel = _dense_kernel

    bytes_in = sum(int(a.size) * a.dtype.itemsize for a in inputs)
    bytes_out = B_p * Dout_p * jnp.dtype(out_dtype).itemsize
    cost = pl.CostEstimate(flops=2 * B_p * Din * Dout_p,
                           transcendentals=0,
                           bytes_accessed=bytes_in + bytes_out)

    out = pl.pallas_call(
        kernel,
        out_shape=jax.ShapeDtypeStruct((B_p, Dout_p), out_dtype),
        grid_spec=pltpu.PrefetchScalarGridSpec(
            num_scalar_prefetch=0,
            grid=grid,
            in_specs=in_specs,
            out_specs=pl.BlockSpec((tm, tn), lambda i, j: (i, j)),
        ),
        compiler_params=pltpu.CompilerParams(
            dimension_semantics=("parallel", "parallel"),
            vmem_limit_bytes=32 * 1024 * 1024,
        ),
        cost_estimate=cost,
    )(*inputs)

    return out[:B, :Dout]


if __name__ == "__main__":
    # Small shapes consistent with the module: DenseBlock(input_dim=32, output_dim=64)
    batch, input_dim, output_dim = 8, 32, 64
    dropout_p = 0.2

    key = jax.random.PRNGKey(0)
    kx, kw, kb, kd = jax.random.split(key, 4)

    # Deterministic init mirroring nn.Linear default: U(-1/sqrt(fan_in), 1/sqrt(fan_in))
    bound = 1.0 / (input_dim ** 0.5)
    x = jax.random.normal(kx, (batch, input_dim), dtype=jnp.float32)
    w = jax.random.uniform(kw, (output_dim, input_dim), jnp.float32, -bound, bound)
    b = jax.random.uniform(kb, (output_dim,), jnp.float32, -bound, bound)

    # Reference with bf16-rounded MXU operands (kernel matmul runs in bf16,
    # accumulates in f32).
    y_ref = (x.astype(jnp.bfloat16).astype(jnp.float32)
             @ w.astype(jnp.bfloat16).astype(jnp.float32).T) + b

    # Eval-mode path (dropout = identity).
    y_eval = jax.block_until_ready(
        dense_block(x, w, b, dropout_p=dropout_p, training=False))
    assert y_eval.shape == (batch, output_dim)
    assert jnp.allclose(y_eval, y_ref, atol=1e-3, rtol=1e-3), "eval-mode mismatch"

    # Training-mode path (stochastic dropout, deterministic key).
    y_train = jax.block_until_ready(
        dense_block(x, w, b, dropout_p=dropout_p, training=True, rng_key=kd))
    assert y_train.shape == (batch, output_dim)
    # Every surviving element equals ref/(1-p); dropped elements are exactly 0.
    keep = y_train != 0.0
    assert jnp.allclose(jnp.where(keep, y_train, 0.0),
                        jnp.where(keep, y_ref / (1.0 - dropout_p), 0.0),
                        atol=1e-3, rtol=1e-3), "train-mode dropout scaling mismatch"

    print("KERNEL_OK")
</pallas_src>

<mosaic_0001>
module attributes {stable_mosaic.version = 11 : i64} {
  func.func @_dense_kernel(%arg0: i32, %arg1: i32, %arg2: memref<8x32xbf16, #tpu.memory_space<vmem>>, %arg3: memref<128x32xbf16, #tpu.memory_space<vmem>>, %arg4: memref<1x128xf32, #tpu.memory_space<vmem>>, %arg5: memref<8x128xf32, #tpu.memory_space<vmem>>) attributes {dimension_semantics = [#tpu.dimension_semantics<parallel>, #tpu.dimension_semantics<parallel>], iteration_bounds = array<i64: 1, 1>, scalar_prefetch = 0 : i64, scratch_operands = 0 : i64, tpu.core_type = #tpu.core_type<tc>, window_params = [{transform_indices = @transform_0, window_bounds = array<i64: 8, 32>}, {transform_indices = @transform_1, window_bounds = array<i64: 128, 32>}, {transform_indices = @transform_2, window_bounds = array<i64: 1, 128>}, {transform_indices = @transform_3, window_bounds = array<i64: 8, 128>}]} {
    %c0 = arith.constant 0 : index
    %c0_0 = arith.constant 0 : index
    %0 = vector.load %arg2[%c0, %c0_0] : memref<8x32xbf16, #tpu.memory_space<vmem>>, vector<8x32xbf16>
    %c0_1 = arith.constant 0 : index
    %c0_2 = arith.constant 0 : index
    %1 = vector.load %arg3[%c0_1, %c0_2] : memref<128x32xbf16, #tpu.memory_space<vmem>>, vector<128x32xbf16>
    %cst = arith.constant dense<0.000000e+00> : vector<8x128xf32>
    %2 = tpu.matmul %0, %1, %cst {dimension_numbers = #tpu.dot_dimension_numbers<[1], [1], [0], [0], [0, 0, 1, 0], [], []>} : vector<8x32xbf16>, vector<128x32xbf16>, vector<8x128xf32> -> vector<8x128xf32>
    %c0_3 = arith.constant 0 : index
    %c0_4 = arith.constant 0 : index
    %3 = vector.load %arg4[%c0_3, %c0_4] : memref<1x128xf32, #tpu.memory_space<vmem>>, vector<1x128xf32>
    %4 = vector.broadcast %3 : vector<1x128xf32> to vector<8x128xf32>
    %5 = arith.addf %2, %4 : vector<8x128xf32>
    %c0_5 = arith.constant 0 : index
    %c0_6 = arith.constant 0 : index
    %6 = vector.load %arg5[%c0_5, %c0_6] : memref<8x128xf32, #tpu.memory_space<vmem>>, vector<8x128xf32>
    tpu.vector_store %arg5[%c0_5, %c0_6], %5 {strides = array<i32>} : memref<8x128xf32, #tpu.memory_space<vmem>>, vector<8x128xf32>,
    return
  }
  func.func @transform_0(%arg0: i32, %arg1: i32) -> (i32, i32) {
    %c0_i32 = arith.constant 0 : i32
    %c0_i32_0 = arith.constant 0 : i32
    return %arg0, %c0_i32 : i32, i32
  }
  func.func @transform_1(%arg0: i32, %arg1: i32) -> (i32, i32) {
    %c0_i32 = arith.constant 0 : i32
    %c0_i32_0 = arith.constant 0 : i32
    return %arg1, %c0_i32 : i32, i32
  }
  func.func @transform_2(%arg0: i32, %arg1: i32) -> (i32, i32) {
    %c0_i32 = arith.constant 0 : i32
    %c0_i32_0 = arith.constant 0 : i32
    return %c0_i32, %arg1 : i32, i32
  }
  func.func @transform_3(%arg0: i32, %arg1: i32) -> (i32, i32) {
    %c0_i32 = arith.constant 0 : i32
    return %arg0, %arg1 : i32, i32
  }
}

</mosaic_0001>

<bundles_post_ra>
// kernel: tpu_custom_call.1
= control target key start
LH: loop header
LB: loop body
LE: loop exit
PB: predicated region body
PF: predicated region fallthrough
CT: control target
= control target key end

     0   :  { %vm76_vm0 = vcmask 261120   ;;  %s266_s0 = inlined_call_operand.vmem [shape: bf16[8,32], index: 0, kind: input, shape index: {}]   ;;  %s267_s1 = inlined_call_operand.vmem [shape: bf16[128,32], index: 1, kind: input, shape index: {}]   ;;  %s268_s2 = inlined_call_operand.vmem [shape: f32[1,128], index: 2, kind: input, shape index: {}]   ;;  %s269_s3 = inlined_call_operand.hbm [shape: f32[8,128], index: 3, kind: output, shape index: {}]  }
   0x1   :  { %v174_v0 = vld [vmem:[%s267_s1 + $0x38] sm:$0xff] }
   0x2   :  { %v102_v1 = vsel %vm76_vm0, %v174_v0, 0 }
   0x3   :  { %8 = vsyncpa [#allocation3], 0  ;;  %104 = vmatpush.bf16.xpose.msra.mxu0 %v102_v1  ;;  %v173_v2 = vld [vmem:[%s267_s1 + $0x30] sm:$0xff]  ;;  %v172_v4 = vld [vmem:[%s267_s1 + $0x28] sm:$0xff]  ;;  %s203_s5 = smov [#allocation2]   ;;  %s125_s9 = sshll.u32 %s269_s3, 4  ;;  %s126_s9 = int_to_ptr.hbm [resolvable:$true] %s125_s9 }
   0x4   :  { %v99_v3 = vsel %vm76_vm0, %v173_v2, 0  ;;  %v96_v5 = vsel %vm76_vm0, %v172_v4, 0  ;;  %v171_v6 = vld [vmem:[%s267_s1 + $0x20] sm:$0xff]  ;;  %v170_v8 = vld [vmem:[%s267_s1 + $0x18] sm:$0xff]  ;;  %v169_v10 = vld [vmem:[%s267_s1 + $0x10] sm:$0xff]  ;;  %s123_s6 = sshll.u32 %s203_s5, 4  ;;  %s124_s6 = int_to_ptr.vmem [resolvable:$true] %s123_s6 }
   0x5   :  { %v93_v7 = vsel %vm76_vm0, %v171_v6, 0  ;;  %v90_v9 = vsel %vm76_vm0, %v170_v8, 0  ;;  %v87_v11 = vsel %vm76_vm0, %v169_v10, 0  ;;  %v168_v12 = vld [vmem:[%s267_s1 + $0x8] sm:$0xff]  ;;  %v167_v14 = vld [vmem:[%s267_s1] sm:$0xff] }
   0x6   :  { %v84_v13 = vsel %vm76_vm0, %v168_v12, 0  ;;  %v81_v15 = vsel %vm76_vm0, %v167_v14, 0  ;;  %v15_v16 = vld [vmem:[%s266_s0] sm:$0xf] }
   0x7   :  { %v176_v17 = vld [vmem:[%s268_s2] ss:$0 sm:$0xff] }
   0xb   :  { %105 = vmatpush.bf16.xpose.msra.mxu0 %v99_v3 }
  0x13   :  { %106 = vmatpush.bf16.xpose.msra.mxu0 %v96_v5 }
  0x1b   :  { %107 = vmatpush.bf16.xpose.msra.mxu0 %v93_v7 }
  0x23   :  { %108 = vmatpush.bf16.xpose.msra.mxu0 %v90_v9 }
  0x2b   :  { %109 = vmatpush.bf16.xpose.msra.mxu0 %v87_v11 }
  0x33   :  { %110 = vmatpush.bf16.xpose.msra.mxu0 %v84_v13 }
  0x3b   :  { %111 = vmatpush.bf16.xpose.msra.mxu0 %v81_v15 }
  0x42   :  { %166 = vmatmul.msk.bf16.vlgmr.msra.gmra.mxu0 %vm76_vm0, %v15_v16 }
  0xbf   :  { %v113_v18 = vpop.f32.mrf.mxu0 }
  0xc0   :  { %v114_v19 = vadd.f32 %v176_v17, %v113_v18 }
  0xc2   :  { %117 = vst [vmem:[#allocation2] sm:$0xff] %v114_v19 }
  0xc3   :  { %128 = dma.vmem_to_hbm [thread:$0]  %s124_s6, 128, %s126_s9, [#allocation3]  }
  0xc7   :  { %v115_v20 = vpop.f32.mrf.mxu0 }
  0xc8   :  { %201 = dma.done.wait [#allocation3], 128  }
  0xc9   :  { %202 = vsyncadd [#allocation3], 4294967168 }
  0xca   :  { %133 = vsyncpa [#allocation3], 1 }

</bundles_post_ra>
